<compile_context>
chip_gen: v7x
topology: tpu7x:2x2x1
jax: 0.10.0
libtpu: 0.0.40
codegen_flags: <defaults>
</compile_context>

<pallas_src>
import functools

import jax
import jax.numpy as jnp
from jax.experimental import pallas as pl
from jax.experimental.pallas import tpu as pltpu


def build_pe_table(max_len: int, dims: int) -> jnp.ndarray:
    """Replicates the PyTorch _build() loop: sin(pos/10000^(2i/dims)) on even
    columns, cos(pos/10000^(2(i+1)/dims)) on the paired odd columns."""
    assert dims % 2 == 0
    pos = jnp.arange(max_len, dtype=jnp.float32)[:, None]          # [max_len, 1]
    i_even = jnp.arange(0, dims, 2, dtype=jnp.float32)[None, :]    # [1, dims/2]
    i_odd = i_even + 1.0
    sin_vals = jnp.sin(pos / jnp.power(10000.0, 2.0 * i_even / dims))
    cos_vals = jnp.cos(pos / jnp.power(10000.0, 2.0 * i_odd / dims))
    pe = jnp.zeros((max_len, dims), dtype=jnp.float32)
    pe = pe.at[:, 0::2].set(sin_vals)
    pe = pe.at[:, 1::2].set(cos_vals)
    return pe


def _pe_gather_kernel(max_x, max_y, dims, xy_ref, pe_ref, out_ref):
    # xy_ref : [1, 2] f32 in SMEM   -> raw (x, y) gaze coordinates.
    # pe_ref : [max_x + max_y, dims] f32 in VMEM (pe_x rows then pe_y rows).
    # out_ref: [1, 2 * dims] f32 in VMEM.
    xf = xy_ref[0, 0]
    yf = xy_ref[0, 1]

    table = pe_ref[...]                                        # [T, dims]
    rows = jax.lax.broadcasted_iota(jnp.int32, table.shape, 0).astype(jnp.float32)

    # Broadcast the scalars into vregs and clamp in vector space (keeps all the
    # math on the VPU; no scalar float->int casts, no dynamic-address loads).
    xv = jnp.clip(jnp.full(table.shape, xf, dtype=jnp.float32),
                  0.0, float(max_x - 1))
    yv = jnp.clip(jnp.full(table.shape, yf, dtype=jnp.float32),
                  0.0, float(max_y - 1)) + float(max_x)

    # Row r is selected iff r <= coord < r + 1  (== trunc-toward-zero / int()
    # for non-negative coords).  xv lives in [0, max_x-1] so it can only select
    # pe_x rows; yv lives in [max_x, max_x+max_y-1] so only pe_y rows.
    x_mask = (rows <= xv) & (xv < rows + 1.0)
    y_mask = (rows <= yv) & (yv < rows + 1.0)

    x_row = jnp.sum(jnp.where(x_mask, table, 0.0), axis=0, keepdims=True)
    y_row = jnp.sum(jnp.where(y_mask, table, 0.0), axis=0, keepdims=True)

    # Lane-aligned half-row writes (dims is a multiple of 128).
    out_ref[:, :dims] = x_row
    out_ref[:, dims:] = y_row


def positional_encoder_forward(xy_tensor, pe_table, max_x, max_y, dims):
    """xy_tensor: [1, 2] gaze coordinates (f32).
    pe_table : [max_x + max_y, dims] concatenated pe_x / pe_y tables.
    Returns  : [1, 2 * dims] positional encoding."""
    assert pe_table.shape == (max_x + max_y, dims)
    kernel = functools.partial(_pe_gather_kernel, max_x, max_y, dims)
    return pl.pallas_call(
        kernel,
        out_shape=jax.ShapeDtypeStruct((1, 2 * dims), jnp.float32),
        in_specs=[
            pl.BlockSpec(memory_space=pltpu.MemorySpace.SMEM),   # xy scalars
            pl.BlockSpec(memory_space=pltpu.MemorySpace.VMEM),   # PE table
        ],
        out_specs=pl.BlockSpec(memory_space=pltpu.MemorySpace.VMEM),
    )(xy_tensor, pe_table)


if __name__ == "__main__":
    # Small shapes consistent with the module: dims=128 (lane-aligned),
    # max_xy=(16, 24).
    DIMS = 128
    MAX_X, MAX_Y = 16, 24

    pe_x = build_pe_table(MAX_X, DIMS)                    # [16, 128]
    pe_y = build_pe_table(MAX_Y, DIMS)                    # [24, 128]
    pe_table = jnp.concatenate([pe_x, pe_y], axis=0)      # [40, 128], built once

    key = jax.random.PRNGKey(0)
    kx, ky = jax.random.split(key)
    x_coord = jax.random.randint(kx, (), 0, MAX_X)
    y_coord = jax.random.randint(ky, (), 0, MAX_Y)
    # xy_tensor has shape [1, 2] like the PyTorch forward expects.
    xy_tensor = jnp.stack([x_coord, y_coord]).astype(jnp.float32)[None, :]

    out = positional_encoder_forward(xy_tensor, pe_table, MAX_X, MAX_Y, DIMS)
    out = jax.block_until_ready(out)

    # Plain-JAX reference of the int() gather + concat semantics.
    xi = int(xy_tensor[0, 0])
    yi = int(xy_tensor[0, 1])
    ref = jnp.concatenate([pe_x[xi, :], pe_y[yi, :]])[None, :]
    assert out.shape == (1, 2 * DIMS)
    assert jnp.allclose(out, ref, atol=1e-6), "mismatch vs reference"

    print("KERNEL_OK")
</pallas_src>

<mosaic_0001>
module attributes {stable_mosaic.version = 11 : i64} {
  func.func @_pe_gather_kernel(%arg0: memref<1x2xf32, #tpu.memory_space<smem>>, %arg1: memref<40x128xf32, #tpu.memory_space<vmem>>, %arg2: memref<1x256xf32, #tpu.memory_space<vmem>>) attributes {dimension_semantics = [], scalar_prefetch = 0 : i64, scratch_operands = 0 : i64, tpu.core_type = #tpu.core_type<tc>} {
    %c0 = arith.constant 0 : index
    %c0_0 = arith.constant 0 : index
    %0 = memref.load %arg0[%c0, %c0_0] : memref<1x2xf32, #tpu.memory_space<smem>>
    %c0_1 = arith.constant 0 : index
    %c1 = arith.constant 1 : index
    %1 = memref.load %arg0[%c0_1, %c1] : memref<1x2xf32, #tpu.memory_space<smem>>
    %c0_2 = arith.constant 0 : index
    %c0_3 = arith.constant 0 : index
    %2 = vector.load %arg1[%c0_2, %c0_3] : memref<40x128xf32, #tpu.memory_space<vmem>>, vector<40x128xf32>
    %3 = tpu.iota {dimensions = array<i32: 0>} : vector<40x128xi32>
    %4 = arith.sitofp %3 : vector<40x128xi32> to vector<40x128xf32>
    %5 = vector.broadcast %0 : f32 to vector<40x128xf32>
    %cst = arith.constant 0.000000e+00 : f32
    %cst_4 = arith.constant 1.500000e+01 : f32
    %6 = vector.broadcast %cst : f32 to vector<40x128xf32>
    %7 = arith.maximumf %6, %5 : vector<40x128xf32>
    %8 = vector.broadcast %cst_4 : f32 to vector<40x128xf32>
    %9 = arith.minimumf %8, %7 : vector<40x128xf32>
    %10 = vector.broadcast %1 : f32 to vector<40x128xf32>
    %cst_5 = arith.constant 0.000000e+00 : f32
    %cst_6 = arith.constant 2.300000e+01 : f32
    %11 = vector.broadcast %cst_5 : f32 to vector<40x128xf32>
    %12 = arith.maximumf %11, %10 : vector<40x128xf32>
    %13 = vector.broadcast %cst_6 : f32 to vector<40x128xf32>
    %14 = arith.minimumf %13, %12 : vector<40x128xf32>
    %cst_7 = arith.constant 1.600000e+01 : f32
    %15 = vector.broadcast %cst_7 : f32 to vector<40x128xf32>
    %16 = arith.addf %14, %15 : vector<40x128xf32>
    %17 = arith.cmpf ole, %4, %9 : vector<40x128xf32>
    %cst_8 = arith.constant 1.000000e+00 : f32
    %18 = vector.broadcast %cst_8 : f32 to vector<40x128xf32>
    %19 = arith.addf %4, %18 : vector<40x128xf32>
    %20 = arith.cmpf olt, %9, %19 : vector<40x128xf32>
    %21 = arith.andi %17, %20 : vector<40x128xi1>
    %22 = arith.cmpf ole, %4, %16 : vector<40x128xf32>
    %cst_9 = arith.constant 1.000000e+00 : f32
    %23 = vector.broadcast %cst_9 : f32 to vector<40x128xf32>
    %24 = arith.addf %4, %23 : vector<40x128xf32>
    %25 = arith.cmpf olt, %16, %24 : vector<40x128xf32>
    %26 = arith.andi %22, %25 : vector<40x128xi1>
    %cst_10 = arith.constant 0.000000e+00 : f32
    %27 = vector.broadcast %cst_10 : f32 to vector<40x128xf32>
    %28 = arith.select %21, %2, %27 : vector<40x128xi1>, vector<40x128xf32>
    %cst_11 = arith.constant dense<0.000000e+00> : vector<128xf32>
    %29 = vector.multi_reduction <add>, %28, %cst_11 [0] : vector<40x128xf32> to vector<128xf32>
    %30 = vector.shape_cast %29 : vector<128xf32> to vector<1x128xf32>
    %cst_12 = arith.constant 0.000000e+00 : f32
    %31 = vector.broadcast %cst_12 : f32 to vector<40x128xf32>
    %32 = arith.select %26, %2, %31 : vector<40x128xi1>, vector<40x128xf32>
    %cst_13 = arith.constant dense<0.000000e+00> : vector<128xf32>
    %33 = vector.multi_reduction <add>, %32, %cst_13 [0] : vector<40x128xf32> to vector<128xf32>
    %34 = vector.shape_cast %33 : vector<128xf32> to vector<1x128xf32>
    %c0_14 = arith.constant 0 : index
    %c0_15 = arith.constant 0 : index
    %35 = vector.load %arg2[%c0_14, %c0_15] : memref<1x256xf32, #tpu.memory_space<vmem>>, vector<1x128xf32>
    tpu.vector_store %arg2[%c0_14, %c0_15], %30 {strides = array<i32>} : memref<1x256xf32, #tpu.memory_space<vmem>>, vector<1x128xf32>,
    %c0_16 = arith.constant 0 : index
    %c128 = arith.constant 128 : index
    %36 = vector.load %arg2[%c0_16, %c128] : memref<1x256xf32, #tpu.memory_space<vmem>>, vector<1x128xf32>
    tpu.vector_store %arg2[%c0_16, %c128], %34 {strides = array<i32>} : memref<1x256xf32, #tpu.memory_space<vmem>>, vector<1x128xf32>,
    return
  }
}

</mosaic_0001>

<bundles_post_ra>
// kernel: tpu_custom_call.1
= control target key start
LH: loop header
LB: loop body
LE: loop exit
PB: predicated region body
PF: predicated region fallthrough
CT: control target
= control target key end

     0   :  { %7 = vsyncpa [#allocation5], 0  ;;  %s287_s0 = inlined_call_operand.hbm [shape: f32[1,2], index: 0, kind: input, shape index: {}]   ;;  %s288_s1 = inlined_call_operand.hbm [shape: f32[40,128], index: 1, kind: input, shape index: {}]   ;;  %s289_s2 = inlined_call_operand.hbm [shape: f32[1,256], index: 2, kind: output, shape index: {}]  }
   0x1   :  { %8 = vsyncpa [#allocation3], 0 }
   0x2   :  { %9 = vsyncpa [#allocation4], 0  ;;  %s155_s11 = scalar_lea.hbm %s287_s0, 16 }
   0x3   :  { %p156_p0 = scmp.ne.s32.totalorder %s287_s0, %s155_s11  ;;  %p159_p1 = scmp.lt.u32.totalorder %s155_s11, %s287_s0 }
   0x5   :  { %p161_p2 = pnand %p159_p1, %p156_p0 }
   0x7   :  { %164 = shalt.err (!%p161_p2)
}
   0x8   :  { %s215_s16 = smov [#allocation2]   ;;  %s216_s19 = smov [#allocation6]  }
   0x9   :  { %17 = dma.hbm_to_smem %s287_s0, 16, %s215_s16, [#allocation5]  }
   0xa   :  { %s23_s20 = sshll.u32 %s216_s19, 4  ;;  %s165_s23 = scalar_lea.hbm %s288_s1, 640  ;;  %s24_s20 = int_to_ptr.vmem [resolvable:$true] %s23_s20 }
   0xb   :  { %p166_p3 = scmp.ne.s32.totalorder %s288_s1, %s165_s23  ;;  %p169_p4 = scmp.lt.u32.totalorder %s165_s23, %s288_s1 }
   0xd   :  { %p171_p5 = pnand %p169_p4, %p166_p3 }
   0xf   :  { %174 = shalt.err (!%p171_p5)
}
  0x10   :  { %s175_s28 = scalar_lea.vmem %s24_s20, 640  ;;  %p180_p7 = scmp.lt.s32.totalorder %s24_s20, %s24_s20 }
  0x11   :  { %p176_p6 = scmp.ne.s32.totalorder %s24_s20, %s175_s28  ;;  %p181_p8 = scmp.lt.s32.totalorder %s175_s28, %s175_s28 }
  0x13   :  { %p182_p9 = por %p181_p8, %p180_p7 }
  0x15   :  { %p183_p10 = pnand %p182_p9, %p176_p6 }
  0x17   :  { %186 = shalt.err (!%p183_p10)
}
  0x18   :  { %s217_s0 = smov 128   ;;  %s218_s29 = smov 8  }
  0x19   :  { %29 = dma.hbm_to_vmem [thread:$0]  %s288_s1, 640, %s24_s20, [#allocation3], %s217_s0, %s217_s0, %s218_s29  }
  0x1a   :  { %209 = dma.done.wait [#allocation5], 16  }
  0x1b   :  { %210 = vsyncadd [#allocation5], 4294967280 }
  0x1c   :  { %211 = dma.done.wait [#allocation3], 640  }
  0x1d   :  { %212 = vsyncadd [#allocation3], 4294966656 }
  0x1e   :  { %36 = sfence }
  0x1f   :  { %s37_s4 = sld [smem:[#allocation2]]  ;;  %v44_v0 = vlaneseq  ;;  %s149_s5 = sld [smem:[#allocation2 + $0x1]]  ;;  %v39_v22 = vld [vmem:[#allocation6] sm:$0xff]  ;;  %v40_v23 = vld [vmem:[#allocation6 + $0x8] sm:$0xff]  ;;  %v41_v24 = vld [vmem:[#allocation6 + $0x10] sm:$0xff] }
  0x20   :  { %v42_v26 = vld [vmem:[#allocation6 + $0x18] sm:$0xff]  ;;  %v43_v29 = vld [vmem:[#allocation6 + $0x20] sm:$0xff]  ;;  %s219_s1 = smov [#allocation7]  }
  0x21   :  { %v45_v1 = vshrl.u32 %v44_v0, 7  ;;  %s139_s6 = sshll.u32 %s219_s1, 4  ;;  %s140_s6 = int_to_ptr.vmem [resolvable:$true] %s139_s6 }
  0x22   :  { %s187_s7 = scalar_lea.vmem %s140_s6, 32  ;;  %p192_p12 = scmp.lt.s32.totalorder %s140_s6, %s140_s6 }
  0x23   :  { %v46_v2 = vadd.s32 8, %v45_v1  ;;  %v47_v3 = vadd.s32 16, %v45_v1  ;;  %v48_v4 = vadd.s32 24, %v45_v1  ;;  %v49_v5 = vadd.s32 32, %v45_v1  ;;  %p188_p11 = scmp.ne.s32.totalorder %s140_s6, %s187_s7  ;;  %p193_p13 = scmp.lt.s32.totalorder %s187_s7, %s187_s7 }
  0x24   :  { %v50_v6 = vcvt.s32.f32 %v45_v1 }
  0x25   :  { %v51_v7 = vcvt.s32.f32 %v46_v2  ;;  %v52_v8 = vcvt.s32.f32 %v47_v3  ;;  %v53_v9 = vcvt.s32.f32 %v48_v4  ;;  %v54_v10 = vcvt.s32.f32 %v49_v5  ;;  %p194_p0 = por %p193_p13, %p192_p12 }
  0x26   :  { %v55_v11 = vstv %s37_s4  ;;  %v58_v12 = vstv %s149_s5  ;;  %v67_v14 = vadd.f32 1.0, %v50_v6 }
  0x27   :  { %v56_v13 = vmax.f32 %v55_v11, 0.0  ;;  %v68_v15 = vadd.f32 1.0, %v51_v7  ;;  %v69_v16 = vadd.f32 1.0, %v52_v8  ;;  %v59_v17 = vmax.f32 %v58_v12, 0.0  ;;  %p195_p1 = pnand %p194_p0, %p188_p11 }
  0x28   :  { %v70_v19 = vadd.f32 1.0, %v53_v9  ;;  %v71_v20 = vadd.f32 1.0, %v54_v10 }
  0x29   :  { %v57_v18 = vmin.f32 %v56_v13, 15.0  ;;  %v60_v21 = vmin.f32 %v59_v17, 23.0 }
  0x2b   :  { %vm62_vm0 = vcmp.le.f32.partialorder %v50_v6, %v57_v18  ;;  %vm63_vm1 = vcmp.le.f32.partialorder %v51_v7, %v57_v18  ;;  %vm64_vm2 = vcmp.le.f32.partialorder %v52_v8, %v57_v18  ;;  %vm72_vm3 = vcmp.lt.f32.partialorder %v57_v18, %v67_v14 }
  0x2c   :  { %vm73_vm4 = vcmp.lt.f32.partialorder %v57_v18, %v68_v15  ;;  %vm74_vm5 = vcmp.lt.f32.partialorder %v57_v18, %v69_v16  ;;  %vm65_vm6 = vcmp.le.f32.partialorder %v53_v9, %v57_v18  ;;  %vm75_vm7 = vcmp.lt.f32.partialorder %v57_v18, %v70_v19  ;;  %vm77_vm8 = vmand %vm62_vm0, %vm72_vm3 }
  0x2d   :  { %v61_v25 = vadd.f32 16.0, %v60_v21  ;;  %vm66_vm9 = vcmp.le.f32.partialorder %v54_v10, %v57_v18  ;;  %vm76_vm10 = vcmp.lt.f32.partialorder %v57_v18, %v71_v20  ;;  %vm78_vm11 = vmand %vm63_vm1, %vm73_vm4  ;;  %v97_v27 = vsel %vm77_vm8, %v39_v22, 0.0 }
  0x2e   :  { %vm79_vm12 = vmand %vm64_vm2, %vm74_vm5  ;;  %v98_v28 = vsel %vm78_vm11, %v40_v23, 0.0 }
  0x2f   :  { %vm82_vm13 = vcmp.le.f32.partialorder %v50_v6, %v61_v25  ;;  %vm260_vm14 = vmand %vm65_vm6, %vm75_vm7  ;;  %v99_v31 = vsel %vm79_vm12, %v41_v24, 0.0  ;;  %v102_v32 = vadd.f32 %v98_v28, %v97_v27  ;;  %vm83_vm15 = vcmp.le.f32.partialorder %v51_v7, %v61_v25 }
  0x30   :  { %vm84_vm0 = vcmp.le.f32.partialorder %v52_v8, %v61_v25  ;;  %vm264_vm3 = vmand %vm66_vm9, %vm76_vm10  ;;  %v100_v34 = vsel %vm260_vm14, %v42_v26, 0.0  ;;  %vm87_vm1 = vcmp.lt.f32.partialorder %v61_v25, %v67_v14  ;;  %vm88_vm2 = vcmp.lt.f32.partialorder %v61_v25, %v68_v15 }
  0x31   :  { %vm89_vm4 = vcmp.lt.f32.partialorder %v61_v25, %v69_v16  ;;  %v103_v35 = vadd.f32 %v102_v32, %v99_v31  ;;  %vm85_vm5 = vcmp.le.f32.partialorder %v53_v9, %v61_v25  ;;  %vm90_vm6 = vcmp.lt.f32.partialorder %v61_v25, %v70_v19  ;;  %vm92_vm7 = vmand %vm82_vm13, %vm87_vm1 }
  0x32   :  { %v101_v36 = vsel %vm264_vm3, %v43_v29, 0.0  ;;  %vm86_vm8 = vcmp.le.f32.partialorder %v54_v10, %v61_v25  ;;  %vm91_vm11 = vcmp.lt.f32.partialorder %v61_v25, %v71_v20  ;;  %vm93_vm9 = vmand %vm83_vm15, %vm88_vm2  ;;  %v112_v37 = vsel %vm92_vm7, %v39_v22, 0.0 }
  0x33   :  { %v104_v38 = vadd.f32 %v103_v35, %v100_v34  ;;  %vm94_vm10 = vmand %vm84_vm0, %vm89_vm4  ;;  %v113_v39 = vsel %vm93_vm9, %v40_v23, 0.0  ;;  %vm129_vm13 = vcmp.lt.s32.totalorder %v44_v0, 128 }
  0x34   :  { %vm95_vm12 = vmand %vm85_vm5, %vm90_vm6  ;;  %v114_v40 = vsel %vm94_vm10, %v41_v24, 0.0  ;;  %v117_v41 = vadd.f32 %v113_v39, %v112_v37 }
  0x35   :  { %v105_v42 = vadd.f32 %v104_v38, %v101_v36  ;;  %vm96_vm14 = vmand %vm86_vm8, %vm91_vm11  ;;  %v115_v43 = vsel %vm95_vm12, %v42_v26, 0.0 }
  0x36   :  { %v118_v44 = vadd.f32 %v117_v41, %v114_v40  ;;  %v116_v46 = vsel %vm96_vm14, %v43_v29, 0.0 }
  0x37   :  { %v106_v45 = vrot.slane %v105_v42, 4 }
  0x38   :  { %v119_v47 = vadd.f32 %v118_v44, %v115_v43 }
  0x39   :  { %v107_v48 = vadd.f32 %v106_v45, %v105_v42 }
  0x3a   :  { %v120_v49 = vadd.f32 %v119_v47, %v116_v46 }
  0x3b   :  { %v108_v50 = vrot.slane %v107_v48, 2 }
  0x3c   :  { %v121_v51 = vrot.slane %v120_v49, 4 }
  0x3d   :  { %v109_v52 = vadd.f32 %v108_v50, %v107_v48 }
  0x3e   :  { %v122_v53 = vadd.f32 %v121_v51, %v120_v49 }
  0x3f   :  { %v110_v54 = vrot.slane %v109_v52, 1 }
  0x40   :  { %v123_v55 = vrot.slane %v122_v53, 2 }
  0x41   :  { %v111_v56 = vadd.f32 %v110_v54, %v109_v52 }
  0x42   :  { %v124_v57 = vadd.f32 %v123_v55, %v122_v53 }
  0x43   :  { %131 = vst.msk [vmem:[#allocation7] sm:$0x1] %vm129_vm13, %v111_v56 }
  0x44   :  { %v125_v58 = vrot.slane %v124_v57, 1 }
  0x46   :  { %v126_v59 = vadd.f32 %v125_v58, %v124_v57 }
  0x48   :  { %132 = vst.msk [vmem:[#allocation7 + $0x1] sm:$0x1] %vm129_vm13, %v126_v59 }
  0x49   :  { %198 = shalt.err (!%p195_p1)
}
  0x4a   :  { %s199_s10 = scalar_lea.hbm %s289_s2, 32 }
  0x4b   :  { %p200_p2 = scmp.ne.s32.totalorder %s289_s2, %s199_s10  ;;  %p203_p3 = scmp.lt.u32.totalorder %s199_s10, %s289_s2 }
  0x4d   :  { %p205_p4 = pnand %p203_p3, %p200_p2 }
  0x4f   :  { %208 = shalt.err (!%p205_p4)
}
  0x50   :  { %142 = dma.vmem_to_hbm [thread:$0]  %s140_s6, 32, %s289_s2, [#allocation4]  }
  0x51   :  { %213 = dma.done.wait [#allocation4], 32  }
  0x52   :  { %214 = vsyncadd [#allocation4], 4294967264 }
  0x53   :  { %146 = vsyncpa [#allocation3], 1 }
  0x54   :  { %147 = vsyncpa [#allocation4], 1 }
  0x55   :  { %148 = vsyncpa [#allocation5], 1 }

</bundles_post_ra>
